<compile_context>
chip_gen: v5e
topology: v5e:2x2
jax: 0.10.0
libtpu: 0.0.40
codegen_flags: <defaults>
</compile_context>

<pallas_src>
import functools

import jax
import jax.numpy as jnp
import numpy as np
from jax.experimental import pallas as pl
from jax.experimental.pallas import tpu as pltpu

_OUT_LANES = 128  # lane-dense output width (columns 0/1 carry q1/q2)


def _round_up(n, m):
  return ((n + m - 1) // m) * m


def _default_split_layer1():
  """Split layer-1 into two dense HxH matmuls on 128x128-MXU generations."""
  try:
    kind = jax.devices()[0].device_kind.lower()
  except Exception:  # pragma: no cover - e.g. no device query available
    return False
  return any(tag in kind for tag in ("v2", "v3", "v4", "v5"))


def _pick_bm(B, sub):
  """Batch tile: one tile for small batches; otherwise >= 2 grid steps so
  ("parallel",) can shard across v7x's two TensorCores; capped at 2048 rows."""
  if B <= 256:
    return _round_up(max(B, sub), sub)
  return min(2048, _round_up(pl.cdiv(B, 2), max(sub, 128)))


def _double_critic_kernel(x_ref, w0_ref, b0_ref, w1_ref, b1_ref, w2_ref,
                          b2_ref, out_ref, *, split_layer1):
  """One batch tile of the fused DoubleCritic forward (both MLPs at once)."""
  # Grid-invariant weights; hoisted loads at the top of the body.
  w0 = w0_ref[...]            # (Din, 2H)
  b0 = b0_ref[...]            # (1, 2H)        fp32
  b1 = b1_ref[...]            # (1, 2H)        fp32
  w2 = w2_ref[...]            # (2H, 128)      heads in columns 0 / 1
  b2 = b2_ref[...]            # (1, 128)       fp32

  x = x_ref[...]              # (bm, Din) = obs || action, lane-dense

  # Layer 0: both critics at once (W0 = the two first-layer weights
  # concatenated along the output dim).  fp32 accumulation.
  h = jnp.dot(x, w0, preferred_element_type=jnp.float32) + b0
  h = jnp.maximum(h, 0.0)                                           # ReLU

  # Layer 1.
  if split_layer1:
    # 128x128-MXU chips (<= v5): two dense (H, H) matmuls, no zero blocks.
    w1 = w1_ref[...]          # (2, H, H)
    H = w1.shape[-1]
    hc = h.astype(w1.dtype)
    g1 = jnp.dot(hc[:, :H], w1[0], preferred_element_type=jnp.float32)
    g2 = jnp.dot(hc[:, H:], w1[1], preferred_element_type=jnp.float32)
    h = jnp.concatenate([g1, g2], axis=-1) + b1
  else:
    # 256x256-MXU chips (v6e / v7x): one block-diagonal (2H, 2H) matmul.
    w1 = w1_ref[...]          # (2H, 2H)
    h = jnp.dot(h.astype(w1.dtype), w1, preferred_element_type=jnp.float32) + b1
  h = jnp.maximum(h, 0.0)                                           # ReLU

  # Heads: column 0 = q1, column 1 = q2, columns 2..127 are zero padding so
  # the store is a lane-dense unmasked (bm, 128) write.
  q = jnp.dot(h.astype(w2.dtype), w2, preferred_element_type=jnp.float32) + b2
  out_ref[...] = q.astype(out_ref.dtype)


def _fuse_params(params1, params2, *, compute_dtype, split_layer1):
  """Build the fused (2H-wide) weight set from the two per-critic params."""
  H = params1["w1"].shape[0]
  f32 = jnp.float32

  w0 = jnp.concatenate([params1["w0"], params2["w0"]], axis=1)       # (Din, 2H)
  w0 = w0.astype(compute_dtype)
  b0 = jnp.concatenate([params1["b0"], params2["b0"]], axis=1).astype(f32)

  if split_layer1:
    w1 = jnp.stack([params1["w1"], params2["w1"]], axis=0)           # (2, H, H)
  else:
    zhh = jnp.zeros((H, H), params1["w1"].dtype)
    w1 = jnp.block([[params1["w1"], zhh],
                    [zhh, params2["w1"]]])                           # (2H, 2H)
  w1 = w1.astype(compute_dtype)
  b1 = jnp.concatenate([params1["b1"], params2["b1"]], axis=1).astype(f32)

  # Heads padded to 128 lane-dense output columns (0 = q1, 1 = q2).
  w2 = jnp.zeros((2 * H, _OUT_LANES), params1["w2"].dtype)
  w2 = w2.at[:H, 0].set(params1["w2"][:, 0]).at[H:, 1].set(params2["w2"][:, 0])
  w2 = w2.astype(compute_dtype)
  b2 = jnp.zeros((1, _OUT_LANES), f32)
  b2 = b2.at[0, 0].set(params1["b2"][0, 0]).at[0, 1].set(params2["b2"][0, 0])

  return w0, b0, w1, b1, w2, b2


def double_critic_forward(obs, action, params1, params2, *, bm=None,
                          compute_dtype=jnp.bfloat16, split_layer1=None):
  """Pallas-backed DoubleCritic forward.  Returns (q1, q2), each (B, 1)."""
  assert obs.shape[0] == action.shape[0]
  B = obs.shape[0]
  obs_dim = obs.shape[1]
  act_dim = action.shape[1]
  Din = obs_dim + act_dim
  H = params1["w1"].shape[0]
  H2 = 2 * H

  if split_layer1 is None:
    split_layer1 = _default_split_layer1()

  # Batch tile aligned to the compute dtype's sublane packing.
  sub = 16 if jnp.dtype(compute_dtype).itemsize < 4 else 8
  if bm is None:
    bm = _pick_bm(B, sub)
  else:
    bm = _round_up(max(sub, min(bm, _round_up(B, sub))), sub)
  Bp = _round_up(B, bm)

  # Lane-dense packed input (obs || action); batch padding (when needed) is
  # folded into this same single copy instead of a separate jnp.pad pass.
  cd = compute_dtype
  if Bp == B:
    x = jnp.concatenate([obs.astype(cd), action.astype(cd)], axis=-1)
  else:
    x = jnp.zeros((Bp, Din), cd)
    x = x.at[:B, :obs_dim].set(obs.astype(cd))
    x = x.at[:B, obs_dim:].set(action.astype(cd))

  w0, b0, w1, b1, w2, b2 = _fuse_params(
      params1, params2, compute_dtype=cd, split_layer1=split_layer1)

  def const2(shape):
    return pl.BlockSpec(shape, lambda i: (0, 0))     # grid-invariant block

  w1_spec = (pl.BlockSpec((2, H, H), lambda i: (0, 0, 0)) if split_layer1
             else const2((H2, H2)))

  grid_spec = pltpu.PrefetchScalarGridSpec(
      num_scalar_prefetch=0,
      grid=(Bp // bm,),
      in_specs=[
          pl.BlockSpec((bm, Din), lambda i: (i, 0)),
          const2((Din, H2)), const2((1, H2)),
          w1_spec, const2((1, H2)),
          const2((H2, _OUT_LANES)), const2((1, _OUT_LANES)),
      ],
      out_specs=pl.BlockSpec((bm, _OUT_LANES), lambda i: (i, 0)),
  )

  itemsize = jnp.dtype(cd).itemsize
  weight_bytes = (Din * H2 + H2 * H2 + H2 * _OUT_LANES) * itemsize
  flops = 2 * Bp * (Din * H2 + H2 * H2 + H2 * _OUT_LANES)
  bytes_accessed = (Bp * Din * itemsize            # packed input
                    + weight_bytes                 # weights
                    + (2 * H2 + _OUT_LANES) * 4    # fp32 biases
                    + Bp * _OUT_LANES * 4)         # lane-dense fp32 output
  cost = pl.CostEstimate(flops=flops, transcendentals=0,
                         bytes_accessed=bytes_accessed)

  kernel = functools.partial(_double_critic_kernel, split_layer1=split_layer1)
  out = pl.pallas_call(
      kernel,
      grid_spec=grid_spec,
      out_shape=jax.ShapeDtypeStruct((Bp, _OUT_LANES), jnp.float32),
      compiler_params=pltpu.CompilerParams(
          dimension_semantics=("parallel",)),
      cost_estimate=cost,
  )(x, w0, b0, w1, b1, w2, b2)

  return out[:B, 0:1], out[:B, 1:2]


def _init_critic_params(key, in_dim, hidden_dim):
  """Orthogonal weights (as in orthogonal_init), zero biases.

  Weights stored already transposed: (in_features, out_features).
  """
  k0, k1, k2 = jax.random.split(key, 3)
  ortho = jax.nn.initializers.orthogonal()
  w0 = ortho(k0, (hidden_dim, in_dim), jnp.float32).T        # (in, H)
  w1 = ortho(k1, (hidden_dim, hidden_dim), jnp.float32).T    # (H, H)
  w2 = ortho(k2, (1, hidden_dim), jnp.float32).T             # (H, 1)
  return {
      "w0": w0, "b0": jnp.zeros((1, hidden_dim), jnp.float32),
      "w1": w1, "b1": jnp.zeros((1, hidden_dim), jnp.float32),
      "w2": w2, "b2": jnp.zeros((1, 1), jnp.float32),
  }


def _reference_forward(obs, action, params1, params2):
  x = jnp.concatenate([obs, action], axis=-1).astype(jnp.float32)

  def critic(p):
    h = jnp.maximum(x @ p["w0"] + p["b0"], 0.0)
    h = jnp.maximum(h @ p["w1"] + p["b1"], 0.0)
    return h @ p["w2"] + p["b2"]

  return critic(params1), critic(params2)


if __name__ == "__main__":
  # Small shapes consistent with the module: obs_dim=24, action_dim=8,
  # hidden_dim=128, hidden_depth=2.  batch=12 exercises the batch-padding path.
  B, OBS_DIM, ACT_DIM, HIDDEN = 12, 24, 8, 128

  key = jax.random.PRNGKey(0)
  k_obs, k_act, k_c1, k_c2 = jax.random.split(key, 4)
  obs = jax.random.normal(k_obs, (B, OBS_DIM), jnp.float32)
  action = jax.random.normal(k_act, (B, ACT_DIM), jnp.float32)

  params1 = _init_critic_params(k_c1, OBS_DIM + ACT_DIM, HIDDEN)
  params2 = _init_critic_params(k_c2, OBS_DIM + ACT_DIM, HIDDEN)

  r1, r2 = _reference_forward(obs, action, params1, params2)

  # 1) fp32 compute, both layer-1 code paths (fused 256-wide and split
  #    128-wide) — tight tolerance: verifies the kernel math exactly.
  for split in (False, True):
    fwd = jax.jit(functools.partial(double_critic_forward,
                                    compute_dtype=jnp.float32,
                                    split_layer1=split))
    q1, q2 = fwd(obs, action, params1, params2)
    jax.block_until_ready((q1, q2))
    np.testing.assert_allclose(np.asarray(q1), np.asarray(r1),
                               rtol=1e-5, atol=1e-5)
    np.testing.assert_allclose(np.asarray(q2), np.asarray(r2),
                               rtol=1e-5, atol=1e-5)
    assert q1.shape == (B, 1) and q2.shape == (B, 1)

  # 2) Default fast path: bf16 compute (fp32 accumulation), chip-gated layer-1.
  #    Loose tolerance covers the expected bf16 input-rounding error.
  fwd = jax.jit(double_critic_forward)
  q1, q2 = fwd(obs, action, params1, params2)
  jax.block_until_ready((q1, q2))
  np.testing.assert_allclose(np.asarray(q1), np.asarray(r1),
                             rtol=5e-2, atol=5e-2)
  np.testing.assert_allclose(np.asarray(q2), np.asarray(r2),
                             rtol=5e-2, atol=5e-2)
  assert q1.shape == (B, 1) and q2.shape == (B, 1)

  print("KERNEL_OK")
</pallas_src>

<mosaic_0001>
module attributes {stable_mosaic.version = 11 : i64} {
  func.func @_double_critic_kernel(%arg0: i32, %arg1: memref<16x32xf32, #tpu.memory_space<vmem>>, %arg2: memref<32x256xf32, #tpu.memory_space<vmem>>, %arg3: memref<1x256xf32, #tpu.memory_space<vmem>>, %arg4: memref<256x256xf32, #tpu.memory_space<vmem>>, %arg5: memref<1x256xf32, #tpu.memory_space<vmem>>, %arg6: memref<256x128xf32, #tpu.memory_space<vmem>>, %arg7: memref<1x128xf32, #tpu.memory_space<vmem>>, %arg8: memref<16x128xf32, #tpu.memory_space<vmem>>) attributes {dimension_semantics = [#tpu.dimension_semantics<parallel>], iteration_bounds = array<i64: 1>, scalar_prefetch = 0 : i64, scratch_operands = 0 : i64, tpu.core_type = #tpu.core_type<tc>, window_params = [{transform_indices = @transform_0, window_bounds = array<i64: 16, 32>}, {pipeline_mode = #tpu.pipeline_mode<synchronous>, transform_indices = @transform_1, window_bounds = array<i64: 32, 256>}, {pipeline_mode = #tpu.pipeline_mode<synchronous>, transform_indices = @transform_2, window_bounds = array<i64: 1, 256>}, {pipeline_mode = #tpu.pipeline_mode<synchronous>, transform_indices = @transform_3, window_bounds = array<i64: 256, 256>}, {pipeline_mode = #tpu.pipeline_mode<synchronous>, transform_indices = @transform_4, window_bounds = array<i64: 1, 256>}, {pipeline_mode = #tpu.pipeline_mode<synchronous>, transform_indices = @transform_5, window_bounds = array<i64: 256, 128>}, {pipeline_mode = #tpu.pipeline_mode<synchronous>, transform_indices = @transform_6, window_bounds = array<i64: 1, 128>}, {transform_indices = @transform_7, window_bounds = array<i64: 16, 128>}]} {
    %c0 = arith.constant 0 : index
    %c0_0 = arith.constant 0 : index
    %0 = vector.load %arg2[%c0, %c0_0] : memref<32x256xf32, #tpu.memory_space<vmem>>, vector<32x256xf32>
    %c0_1 = arith.constant 0 : index
    %c0_2 = arith.constant 0 : index
    %1 = vector.load %arg3[%c0_1, %c0_2] : memref<1x256xf32, #tpu.memory_space<vmem>>, vector<1x256xf32>
    %c0_3 = arith.constant 0 : index
    %c0_4 = arith.constant 0 : index
    %2 = vector.load %arg5[%c0_3, %c0_4] : memref<1x256xf32, #tpu.memory_space<vmem>>, vector<1x256xf32>
    %c0_5 = arith.constant 0 : index
    %c0_6 = arith.constant 0 : index
    %3 = vector.load %arg6[%c0_5, %c0_6] : memref<256x128xf32, #tpu.memory_space<vmem>>, vector<256x128xf32>
    %c0_7 = arith.constant 0 : index
    %c0_8 = arith.constant 0 : index
    %4 = vector.load %arg7[%c0_7, %c0_8] : memref<1x128xf32, #tpu.memory_space<vmem>>, vector<1x128xf32>
    %c0_9 = arith.constant 0 : index
    %c0_10 = arith.constant 0 : index
    %5 = vector.load %arg1[%c0_9, %c0_10] : memref<16x32xf32, #tpu.memory_space<vmem>>, vector<16x32xf32>
    %cst = arith.constant dense<0.000000e+00> : vector<16x256xf32>
    %6 = tpu.matmul %5, %0, %cst {dimension_numbers = #tpu.dot_dimension_numbers<[1], [0], [0], [1], [0, 0, 1, 1], [], []>} : vector<16x32xf32>, vector<32x256xf32>, vector<16x256xf32> -> vector<16x256xf32>
    %7 = vector.broadcast %1 : vector<1x256xf32> to vector<16x256xf32>
    %8 = arith.addf %6, %7 : vector<16x256xf32>
    %cst_11 = arith.constant 0.000000e+00 : f32
    %9 = vector.broadcast %cst_11 : f32 to vector<16x256xf32>
    %10 = arith.maximumf %8, %9 : vector<16x256xf32>
    %c0_12 = arith.constant 0 : index
    %c0_13 = arith.constant 0 : index
    %11 = vector.load %arg4[%c0_12, %c0_13] : memref<256x256xf32, #tpu.memory_space<vmem>>, vector<256x256xf32>
    %cst_14 = arith.constant dense<0.000000e+00> : vector<16x256xf32>
    %12 = tpu.matmul %10, %11, %cst_14 {dimension_numbers = #tpu.dot_dimension_numbers<[1], [0], [0], [1], [0, 0, 1, 1], [], []>} : vector<16x256xf32>, vector<256x256xf32>, vector<16x256xf32> -> vector<16x256xf32>
    %13 = vector.broadcast %2 : vector<1x256xf32> to vector<16x256xf32>
    %14 = arith.addf %12, %13 : vector<16x256xf32>
    %cst_15 = arith.constant 0.000000e+00 : f32
    %15 = vector.broadcast %cst_15 : f32 to vector<16x256xf32>
    %16 = arith.maximumf %14, %15 : vector<16x256xf32>
    %cst_16 = arith.constant dense<0.000000e+00> : vector<16x128xf32>
    %17 = tpu.matmul %16, %3, %cst_16 {dimension_numbers = #tpu.dot_dimension_numbers<[1], [0], [0], [1], [0, 0, 1, 1], [], []>} : vector<16x256xf32>, vector<256x128xf32>, vector<16x128xf32> -> vector<16x128xf32>
    %18 = vector.broadcast %4 : vector<1x128xf32> to vector<16x128xf32>
    %19 = arith.addf %17, %18 : vector<16x128xf32>
    %c0_17 = arith.constant 0 : index
    %c0_18 = arith.constant 0 : index
    %20 = vector.load %arg8[%c0_17, %c0_18] : memref<16x128xf32, #tpu.memory_space<vmem>>, vector<16x128xf32>
    tpu.vector_store %arg8[%c0_17, %c0_18], %19 {strides = array<i32>} : memref<16x128xf32, #tpu.memory_space<vmem>>, vector<16x128xf32>,
    return
  }
  func.func @transform_0(%arg0: i32) -> (i32, i32) {
    %c0_i32 = arith.constant 0 : i32
    %c0_i32_0 = arith.constant 0 : i32
    return %arg0, %c0_i32 : i32, i32
  }
  func.func @transform_1(%arg0: i32) -> (i32, i32) {
    %c0_i32 = arith.constant 0 : i32
    %c0_i32_0 = arith.constant 0 : i32
    %c0_i32_1 = arith.constant 0 : i32
    return %c0_i32, %c0_i32_0 : i32, i32
  }
  func.func @transform_2(%arg0: i32) -> (i32, i32) {
    %c0_i32 = arith.constant 0 : i32
    %c0_i32_0 = arith.constant 0 : i32
    %c0_i32_1 = arith.constant 0 : i32
    return %c0_i32, %c0_i32_0 : i32, i32
  }
  func.func @transform_3(%arg0: i32) -> (i32, i32) {
    %c0_i32 = arith.constant 0 : i32
    %c0_i32_0 = arith.constant 0 : i32
    %c0_i32_1 = arith.constant 0 : i32
    return %c0_i32, %c0_i32_0 : i32, i32
  }
  func.func @transform_4(%arg0: i32) -> (i32, i32) {
    %c0_i32 = arith.constant 0 : i32
    %c0_i32_0 = arith.constant 0 : i32
    %c0_i32_1 = arith.constant 0 : i32
    return %c0_i32, %c0_i32_0 : i32, i32
  }
  func.func @transform_5(%arg0: i32) -> (i32, i32) {
    %c0_i32 = arith.constant 0 : i32
    %c0_i32_0 = arith.constant 0 : i32
    %c0_i32_1 = arith.constant 0 : i32
    return %c0_i32, %c0_i32_0 : i32, i32
  }
  func.func @transform_6(%arg0: i32) -> (i32, i32) {
    %c0_i32 = arith.constant 0 : i32
    %c0_i32_0 = arith.constant 0 : i32
    %c0_i32_1 = arith.constant 0 : i32
    return %c0_i32, %c0_i32_0 : i32, i32
  }
  func.func @transform_7(%arg0: i32) -> (i32, i32) {
    %c0_i32 = arith.constant 0 : i32
    %c0_i32_0 = arith.constant 0 : i32
    return %arg0, %c0_i32 : i32, i32
  }
}

</mosaic_0001>

<bundles_post_ra>
// kernel: double_critic_forward.1
= control target key start
LH: loop header
LB: loop body
LE: loop exit
PB: predicated region body
PF: predicated region fallthrough
CT: control target
= control target key end

     0   :  { %vm76_vm0 = vcmask 261120   ;;  %s735_s1 = inlined_call_operand.vmem [shape: f32[32,256], index: 1, kind: input, shape index: {}]   ;;  %s736_s3 = inlined_call_operand.vmem [shape: f32[256,256], index: 3, kind: input, shape index: {}]   ;;  %s737_s0 = inlined_call_operand.vmem [shape: f32[16,32], index: 0, kind: input, shape index: {}]   ;;  %s738_s5 = inlined_call_operand.vmem [shape: f32[256,128], index: 5, kind: input, shape index: {}]   ;;  %s739_s2 = inlined_call_operand.vmem [shape: f32[1,256], index: 2, kind: input, shape index: {}]   ;;  %s740_s4 = inlined_call_operand.vmem [shape: f32[1,256], index: 4, kind: input, shape index: {}]   ;;  %s741_s6 = inlined_call_operand.vmem [shape: f32[1,128], index: 6, kind: input, shape index: {}]   ;;  %s742_s7 = inlined_call_operand.vmem [shape: f32[16,128], index: 7, kind: output, shape index: {}]  }
   0x1   :  { %v32_v0 = vld [vmem:[%s735_s1 + $0x30] sm:$0xff]  ;;  %v30_v1 = vld [vmem:[%s735_s1 + $0x20] sm:$0xff]  ;;  %v33_v2 = vld [vmem:[%s735_s1 + $0x38] sm:$0xff] }
   0x2   :  { %95 = vmatpush.msra.mxu0 %v32_v0  ;;  %118 = vmatpush.msra.mxu1 %v33_v2  ;;  %v31_v3 = vld [vmem:[%s735_s1 + $0x28] sm:$0xff]  ;;  %v28_v4 = vld [vmem:[%s735_s1 + $0x10] sm:$0xff]  ;;  %v29_v5 = vld [vmem:[%s735_s1 + $0x18] sm:$0xff] }
   0x3   :  { %v26_v6 = vld [vmem:[%s735_s1] sm:$0xff]  ;;  %v163_v7 = vld [vmem:[%s736_s3 + $0xf0] sm:$0xff]  ;;  %v27_v8 = vld [vmem:[%s735_s1 + $0x8] sm:$0xff] }
   0x4   :  { %96 = vmatpush.msra.mxu0 %v30_v1  ;;  %119 = vmatpush.msra.mxu1 %v31_v3  ;;  %v161_v9 = vld [vmem:[%s736_s3 + $0xe0] sm:$0xff]  ;;  %v195_v10 = vld [vmem:[%s736_s3 + $0x1f0] sm:$0xff]  ;;  %v164_v12 = vld [vmem:[%s736_s3 + $0xf8] sm:$0xff] }
   0x5   :  { %202 = vmatpush.msra.mxu2 %v163_v7  ;;  %v69_v11 = vld [vmem:[%s737_s0] sm:$0xff]  ;;  %225 = vmatpush.msra.mxu3 %v195_v10  ;;  %v196_v13 = vld [vmem:[%s736_s3 + $0x1f8] sm:$0xff]  ;;  %v159_v14 = vld [vmem:[%s736_s3 + $0xd0] sm:$0xff] }
   0x6   :  { %97 = vmatpush.msra.mxu0 %v28_v4  ;;  %120 = vmatpush.msra.mxu1 %v29_v5  ;;  %v193_v15 = vld [vmem:[%s736_s3 + $0x1e0] sm:$0xff]  ;;  %v162_v16 = vld [vmem:[%s736_s3 + $0xe8] sm:$0xff]  ;;  %v191_v19 = vld [vmem:[%s736_s3 + $0x1d0] sm:$0xff] }
   0x7   :  { %203 = vmatpush.msra.mxu2 %v161_v9  ;;  %v194_v17 = vld [vmem:[%s736_s3 + $0x1e8] sm:$0xff]  ;;  %v157_v18 = vld [vmem:[%s736_s3 + $0xc0] sm:$0xff]  ;;  %226 = vmatpush.msra.mxu3 %v193_v15  ;;  %v160_v20 = vld [vmem:[%s736_s3 + $0xd8] sm:$0xff] }
   0x8   :  { %98 = vmatpush.msra.mxu0 %v26_v6  ;;  %121 = vmatpush.msra.mxu1 %v27_v8  ;;  %v192_v21 = vld [vmem:[%s736_s3 + $0x1d8] sm:$0xff]  ;;  %v155_v22 = vld [vmem:[%s736_s3 + $0xb0] sm:$0xff]  ;;  %v189_v23 = vld [vmem:[%s736_s3 + $0x1c0] sm:$0xff] }
   0x9   :  { %353 = vmatmul.msk.f32.vlgmr.msra.gmra.mxu0 %vm76_vm0, %v69_v11  ;;  %355 = vmatmul.msk.f32.vlgmr.msra.gmra.mxu1 %vm76_vm0, %v69_v11  ;;  %v158_v24 = vld [vmem:[%s736_s3 + $0xc8] sm:$0xff]  ;;  %v156_v27 = vld [vmem:[%s736_s3 + $0xb8] sm:$0xff]  ;;  %v153_v28 = vld [vmem:[%s736_s3 + $0xa0] sm:$0xff] }
   0xa   :  { %248 = vmatpush.msrb.mxu0 %v164_v12  ;;  %271 = vmatpush.msrb.mxu1 %v196_v13  ;;  %v190_v25 = vld [vmem:[%s736_s3 + $0x1c8] sm:$0xff]  ;;  %v187_v29 = vld [vmem:[%s736_s3 + $0x1b0] sm:$0xff]  ;;  %v188_v30 = vld [vmem:[%s736_s3 + $0x1b8] sm:$0xff] }
   0xb   :  { %204 = vmatpush.msra.mxu2 %v159_v14  ;;  %227 = vmatpush.msra.mxu3 %v191_v19  ;;  %v70_v26 = vld [vmem:[%s737_s0 + $0x8] sm:$0xff]  ;;  %v151_v32 = vld [vmem:[%s736_s3 + $0x90] sm:$0xff]  ;;  %v185_v33 = vld [vmem:[%s736_s3 + $0x1a0] sm:$0xff] }
   0xc   :  { %249 = vmatpush.msrb.mxu0 %v162_v16  ;;  %272 = vmatpush.msrb.mxu1 %v194_v17  ;;  %v154_v31 = vld [vmem:[%s736_s3 + $0xa8] sm:$0xff]  ;;  %v152_v35 = vld [vmem:[%s736_s3 + $0x98] sm:$0xff]  ;;  %v149_v36 = vld [vmem:[%s736_s3 + $0x80] sm:$0xff] }
   0xd   :  { %205 = vmatpush.msra.mxu2 %v157_v18  ;;  %228 = vmatpush.msra.mxu3 %v189_v23  ;;  %v186_v34 = vld [vmem:[%s736_s3 + $0x1a8] sm:$0xff]  ;;  %v183_v37 = vld [vmem:[%s736_s3 + $0x190] sm:$0xff]  ;;  %v184_v38 = vld [vmem:[%s736_s3 + $0x198] sm:$0xff] }
   0xe   :  { %250 = vmatpush.msrb.mxu0 %v160_v20  ;;  %273 = vmatpush.msrb.mxu1 %v192_v21  ;;  %v150_v39 = vld [vmem:[%s736_s3 + $0x88] sm:$0xff]  ;;  %v147_v40 = vld [vmem:[%s736_s3 + $0x70] sm:$0xff]  ;;  %v181_v41 = vld [vmem:[%s736_s3 + $0x180] sm:$0xff] }
   0xf   :  { %206 = vmatpush.msra.mxu2 %v155_v22  ;;  %229 = vmatpush.msra.mxu3 %v187_v29  ;;  %v182_v42 = vld [vmem:[%s736_s3 + $0x188] sm:$0xff]  ;;  %v148_v43 = vld [vmem:[%s736_s3 + $0x78] sm:$0xff]  ;;  %v145_v44 = vld [vmem:[%s736_s3 + $0x60] sm:$0xff] }
  0x10   :  { %251 = vmatpush.msrb.mxu0 %v158_v24  ;;  %274 = vmatpush.msrb.mxu1 %v190_v25  ;;  %v179_v45 = vld [vmem:[%s736_s3 + $0x170] sm:$0xff]  ;;  %v180_v46 = vld [vmem:[%s736_s3 + $0x178] sm:$0xff]  ;;  %v146_v47 = vld [vmem:[%s736_s3 + $0x68] sm:$0xff] }
  0x11   :  { %354 = vmatmul.msk.f32.gmra.mxu0 %vm76_vm0, %v70_v26  ;;  %356 = vmatmul.msk.f32.gmra.mxu1 %vm76_vm0, %v70_v26  ;;  %v143_v48 = vld [vmem:[%s736_s3 + $0x50] sm:$0xff]  ;;  %v177_v49 = vld [vmem:[%s736_s3 + $0x160] sm:$0xff]  ;;  %v178_v50 = vld [vmem:[%s736_s3 + $0x168] sm:$0xff] }
  0x12   :  { %252 = vmatpush.msrb.mxu0 %v156_v27  ;;  %207 = vmatpush.msra.mxu2 %v153_v28  ;;  %v144_v51 = vld [vmem:[%s736_s3 + $0x58] sm:$0xff]  ;;  %v141_v52 = vld [vmem:[%s736_s3 + $0x40] sm:$0xff]  ;;  %v175_v53 = vld [vmem:[%s736_s3 + $0x150] sm:$0xff] }
  0x13   :  { %275 = vmatpush.msrb.mxu1 %v188_v30  ;;  %230 = vmatpush.msra.mxu3 %v185_v33  ;;  %v176_v54 = vld [vmem:[%s736_s3 + $0x158] sm:$0xff]  ;;  %v142_v55 = vld [vmem:[%s736_s3 + $0x48] sm:$0xff]  ;;  %v139_v56 = vld [vmem:[%s736_s3 + $0x30] sm:$0xff] }
  0x14   :  { %253 = vmatpush.msrb.mxu0 %v154_v31  ;;  %208 = vmatpush.msra.mxu2 %v151_v32  ;;  %v173_v57 = vld [vmem:[%s736_s3 + $0x140] sm:$0xff]  ;;  %v174_v58 = vld [vmem:[%s736_s3 + $0x148] sm:$0xff]  ;;  %v140_v59 = vld [vmem:[%s736_s3 + $0x38] sm:$0xff] }
  0x15   :  { %276 = vmatpush.msrb.mxu1 %v186_v34  ;;  %231 = vmatpush.msra.mxu3 %v183_v37  ;;  %v137_v60 = vld [vmem:[%s736_s3 + $0x20] sm:$0xff]  ;;  %v171_v61 = vld [vmem:[%s736_s3 + $0x130] sm:$0xff]  ;;  %v138_v62 = vld [vmem:[%s736_s3 + $0x28] sm:$0xff] }
  0x16   :  { %254 = vmatpush.msrb.mxu0 %v152_v35  ;;  %209 = vmatpush.msra.mxu2 %v149_v36  ;;  %v172_v63 = vld [vmem:[%s736_s3 + $0x138] sm:$0xff]  ;;  %v135_v0 = vld [vmem:[%s736_s3 + $0x10] sm:$0xff]  ;;  %v169_v1 = vld [vmem:[%s736_s3 + $0x120] sm:$0xff] }
  0x17   :  { %277 = vmatpush.msrb.mxu1 %v184_v38  ;;  %232 = vmatpush.msra.mxu3 %v181_v41  ;;  %v136_v2 = vld [vmem:[%s736_s3 + $0x18] sm:$0xff]  ;;  %v170_v3 = vld [vmem:[%s736_s3 + $0x128] sm:$0xff]  ;;  %v133_v4 = vld [vmem:[%s736_s3] sm:$0xff] }
  0x18   :  { %255 = vmatpush.msrb.mxu0 %v150_v39  ;;  %210 = vmatpush.msra.mxu2 %v147_v40  ;;  %v167_v5 = vld [vmem:[%s736_s3 + $0x110] sm:$0xff]  ;;  %v134_v6 = vld [vmem:[%s736_s3 + $0x8] sm:$0xff]  ;;  %v168_v7 = vld [vmem:[%s736_s3 + $0x118] sm:$0xff] }
  0x19   :  { %278 = vmatpush.msrb.mxu1 %v182_v42  ;;  %233 = vmatpush.msra.mxu3 %v179_v45  ;;  %v165_v8 = vld [vmem:[%s736_s3 + $0x100] sm:$0xff]  ;;  %v166_v9 = vld [vmem:[%s736_s3 + $0x108] sm:$0xff]  ;;  %v67_v10 = vld [vmem:[%s738_s5 + $0xf8] sm:$0xff] }
  0x1a   :  { %256 = vmatpush.msrb.mxu0 %v148_v43  ;;  %211 = vmatpush.msra.mxu2 %v145_v44  ;;  %v66_v11 = vld [vmem:[%s738_s5 + $0xf0] sm:$0xff]  ;;  %v51_v12 = vld [vmem:[%s738_s5 + $0x78] sm:$0xff]  ;;  %v65_v14 = vld [vmem:[%s738_s5 + $0xe8] sm:$0xff] }
  0x1b   :  { %279 = vmatpush.msrb.mxu1 %v180_v46  ;;  %234 = vmatpush.msra.mxu3 %v177_v49  ;;  %v50_v13 = vld [vmem:[%s738_s5 + $0x70] sm:$0xff]  ;;  %v49_v15 = vld [vmem:[%s738_s5 + $0x68] sm:$0xff]  ;;  %v64_v16 = vld [vmem:[%s738_s5 + $0xe0] sm:$0xff] }
  0x1c   :  { %257 = vmatpush.msrb.mxu0 %v146_v47  ;;  %212 = vmatpush.msra.mxu2 %v143_v48  ;;  %v48_v17 = vld [vmem:[%s738_s5 + $0x60] sm:$0xff]  ;;  %v63_v18 = vld [vmem:[%s738_s5 + $0xd8] sm:$0xff]  ;;  %v62_v20 = vld [vmem:[%s738_s5 + $0xd0] sm:$0xff] }
  0x1d   :  { %280 = vmatpush.msrb.mxu1 %v178_v50  ;;  %235 = vmatpush.msra.mxu3 %v175_v53  ;;  %v47_v19 = vld [vmem:[%s738_s5 + $0x58] sm:$0xff]  ;;  %v46_v21 = vld [vmem:[%s738_s5 + $0x50] sm:$0xff]  ;;  %v61_v22 = vld [vmem:[%s738_s5 + $0xc8] sm:$0xff] }
  0x1e   :  { %258 = vmatpush.msrb.mxu0 %v144_v51  ;;  %213 = vmatpush.msra.mxu2 %v141_v52  ;;  %v45_v23 = vld [vmem:[%s738_s5 + $0x48] sm:$0xff]  ;;  %v34_v24 = vld [vmem:[%s739_s2] sm:$0x3]  ;;  %v59_v27 = vld [vmem:[%s738_s5 + $0xb8] sm:$0xff] }
  0x1f   :  { %281 = vmatpush.msrb.mxu1 %v176_v54  ;;  %236 = vmatpush.msra.mxu3 %v173_v57  ;;  %v60_v25 = vld [vmem:[%s738_s5 + $0xc0] sm:$0xff]  ;;  %v72_v28 = vperm.slane %v34_v24, 0  ;;  %v73_v29 = vperm.slane %v34_v24, 1  ;;  %v43_v30 = vld [vmem:[%s738_s5 + $0x38] sm:$0xff]  ;;  %v58_v31 = vld [vmem:[%s738_s5 + $0xb0] sm:$0xff] }
  0x20   :  { %259 = vmatpush.msrb.mxu0 %v142_v55  ;;  %214 = vmatpush.msra.mxu2 %v139_v56  ;;  %v44_v26 = vld [vmem:[%s738_s5 + $0x40] sm:$0xff]  ;;  %v57_v34 = vld [vmem:[%s738_s5 + $0xa8] sm:$0xff]  ;;  %v42_v46 = vld [vmem:[%s738_s5 + $0x30] sm:$0xff] }
  0x21   :  { %282 = vmatpush.msrb.mxu1 %v174_v58  ;;  %237 = vmatpush.msra.mxu3 %v171_v61  ;;  %v56_v39 = vld [vmem:[%s738_s5 + $0xa0] sm:$0xff]  ;;  %v55_v47 = vld [vmem:[%s738_s5 + $0x98] sm:$0xff]  ;;  %v41_v48 = vld [vmem:[%s738_s5 + $0x28] sm:$0xff] }
  0x22   :  { %260 = vmatpush.msrb.mxu0 %v140_v59  ;;  %215 = vmatpush.msra.mxu2 %v137_v60  ;;  %v54_v49 = vld [vmem:[%s738_s5 + $0x90] sm:$0xff]  ;;  %v40_v50 = vld [vmem:[%s738_s5 + $0x20] sm:$0xff]  ;;  %v53_v51 = vld [vmem:[%s738_s5 + $0x88] sm:$0xff] }
  0x23   :  { %283 = vmatpush.msrb.mxu1 %v172_v63  ;;  %238 = vmatpush.msra.mxu3 %v169_v1  ;;  %v39_v52 = vld [vmem:[%s738_s5 + $0x18] sm:$0xff]  ;;  %v52_v53 = vld [vmem:[%s738_s5 + $0x80] sm:$0xff]  ;;  %v38_v54 = vld [vmem:[%s738_s5 + $0x10] sm:$0xff] }
  0x24   :  { %261 = vmatpush.msrb.mxu0 %v138_v62  ;;  %216 = vmatpush.msra.mxu2 %v135_v0  ;;  %v37_v55 = vld [vmem:[%s738_s5 + $0x8] sm:$0xff]  ;;  %v36_v56 = vld [vmem:[%s738_s5] sm:$0xff] }
  0x25   :  { %284 = vmatpush.msrb.mxu1 %v170_v3  ;;  %239 = vmatpush.msra.mxu3 %v167_v5  ;;  %v35_v57 = vld [vmem:[%s740_s4] sm:$0x3] }
  0x26   :  { %262 = vmatpush.msrb.mxu0 %v136_v2  ;;  %217 = vmatpush.msra.mxu2 %v133_v4  ;;  %v199_v58 = vperm.slane %v35_v57, 1  ;;  %v198_v63 = vperm.slane %v35_v57, 0 }
  0x27   :  { %285 = vmatpush.msrb.mxu1 %v168_v7  ;;  %240 = vmatpush.msra.mxu3 %v165_v8 }
  0x28   :  { %263 = vmatpush.msrb.mxu0 %v134_v6  ;;  %301 = vmatpush.msrb.mxu2 %v51_v12 }
  0x29   :  { %286 = vmatpush.msrb.mxu1 %v166_v9  ;;  %324 = vmatpush.msrb.mxu3 %v67_v10 }
  0x2a   :  { %302 = vmatpush.msrb.mxu2 %v50_v13 }
  0x2b   :  { %325 = vmatpush.msrb.mxu3 %v66_v11 }
  0x2c   :  { %303 = vmatpush.msrb.mxu2 %v49_v15 }
  0x2d   :  { %326 = vmatpush.msrb.mxu3 %v65_v14 }
  0x2e   :  { %304 = vmatpush.msrb.mxu2 %v48_v17 }
  0x2f   :  { %327 = vmatpush.msrb.mxu3 %v64_v16  ;;  %v357_v16 = vld [vmem:[%s741_s6] ss:$0 sm:$0xff] }
  0x30   :  { %305 = vmatpush.msrb.mxu2 %v47_v19 }
  0x31   :  { %328 = vmatpush.msrb.mxu3 %v63_v18 }
  0x32   :  { %306 = vmatpush.msrb.mxu2 %v46_v21 }
  0x33   :  { %329 = vmatpush.msrb.mxu3 %v62_v20 }
  0x34   :  { %307 = vmatpush.msrb.mxu2 %v45_v23 }
  0x35   :  { %330 = vmatpush.msrb.mxu3 %v61_v22 }
  0x36   :  { %308 = vmatpush.msrb.mxu2 %v44_v26 }
  0x37   :  { %331 = vmatpush.msrb.mxu3 %v60_v25 }
  0x38   :  { %309 = vmatpush.msrb.mxu2 %v43_v30 }
  0x39   :  { %332 = vmatpush.msrb.mxu3 %v59_v27 }
  0x3a   :  { %310 = vmatpush.msrb.mxu2 %v42_v46 }
  0x3b   :  { %333 = vmatpush.msrb.mxu3 %v58_v31 }
  0x3c   :  { %311 = vmatpush.msrb.mxu2 %v41_v48 }
  0x3d   :  { %334 = vmatpush.msrb.mxu3 %v57_v34 }
  0x3e   :  { %312 = vmatpush.msrb.mxu2 %v40_v50 }
  0x3f   :  { %335 = vmatpush.msrb.mxu3 %v56_v39 }
  0x40   :  { %313 = vmatpush.msrb.mxu2 %v39_v52 }
  0x41   :  { %336 = vmatpush.msrb.mxu3 %v55_v47 }
  0x42   :  { %314 = vmatpush.msrb.mxu2 %v38_v54 }
  0x43   :  { %337 = vmatpush.msrb.mxu3 %v54_v49 }
  0x44   :  { %315 = vmatpush.msrb.mxu2 %v37_v55 }
  0x45   :  { %338 = vmatpush.msrb.mxu3 %v53_v51 }
  0x46   :  { %316 = vmatpush.msrb.mxu2 %v36_v56 }
  0x47   :  { %339 = vmatpush.msrb.mxu3 %v52_v53 }
  0x86   :  { %v100_v32 = vpop.f32.mrf.mxu0  ;;  %v123_v33 = vpop.f32.mrf.mxu1 }
  0x87   :  { %v101_v35 = vadd.f32 %v100_v32, %v72_v28  ;;  %v124_v36 = vadd.f32 %v123_v33, %v73_v29 }
  0x89   :  { %v129_v37 = vmax.f32 %v101_v35, 0.0  ;;  %v130_v38 = vmax.f32 %v124_v36, 0.0 }
  0x8b   :  { %218 = vmatmul.f32.vlgmr.msra.gmra.mxu2 %v129_v37  ;;  %264 = vmatmul.f32.vlgmr.msrb.gmra.mxu0 %v129_v37 }
  0x8c   :  { %241 = vmatmul.f32.vlgmr.msra.gmra.mxu3 %v130_v38  ;;  %287 = vmatmul.f32.vlgmr.msrb.gmra.mxu1 %v130_v38 }
  0x8e   :  { %v103_v40 = vpop.f32.mrf.mxu0  ;;  %v126_v41 = vpop.f32.mrf.mxu1 }
  0x8f   :  { %v104_v42 = vadd.f32 %v103_v40, %v72_v28  ;;  %v127_v43 = vadd.f32 %v126_v41, %v73_v29 }
  0x91   :  { %v131_v44 = vmax.f32 %v104_v42, 0.0  ;;  %v132_v45 = vmax.f32 %v127_v43, 0.0 }
  0x93   :  { %221 = vmatmul.f32.gmra.mxu2 %v131_v44  ;;  %267 = vmatmul.f32.gmra.mxu0 %v131_v44 }
  0x94   :  { %244 = vmatmul.f32.gmra.mxu3 %v132_v45  ;;  %290 = vmatmul.f32.gmra.mxu1 %v132_v45 }
 0x108   :  { %v265_v59 = vpop.f32.mrf.mxu0 }
 0x109   :  { %v266_v60 = vadd.f32 %v265_v59, %v199_v58  ;;  %v288_v61 = vpop.f32.mrf.mxu1 }
 0x10b   :  { %v289_v62 = vadd.f32 %v288_v61, %v266_v60 }
 0x10d   :  { %v295_v0 = vmax.f32 %v289_v62, 0.0 }
 0x10e   :  { %v219_v1 = vpop.f32.mrf.mxu2 }
 0x10f   :  { %v220_v2 = vadd.f32 %v219_v1, %v198_v63  ;;  %340 = vmatmul.f32.vlgmr.msrb.gmra.mxu3 %v295_v0  ;;  %v242_v3 = vpop.f32.mrf.mxu3 }
 0x110   :  { %v268_v4 = vpop.f32.mrf.mxu0 }
 0x111   :  { %v243_v5 = vadd.f32 %v242_v3, %v220_v2  ;;  %v269_v6 = vadd.f32 %v268_v4, %v199_v58  ;;  %v291_v7 = vpop.f32.mrf.mxu1 }
 0x113   :  { %v294_v8 = vmax.f32 %v243_v5, 0.0  ;;  %v292_v9 = vadd.f32 %v291_v7, %v269_v6 }
 0x115   :  { %v297_v10 = vmax.f32 %v292_v9, 0.0  ;;  %317 = vmatmul.f32.vlgmr.msrb.gmra.mxu2 %v294_v8 }
 0x116   :  { %v222_v11 = vpop.f32.mrf.mxu2 }
 0x117   :  { %v223_v12 = vadd.f32 %v222_v11, %v198_v63  ;;  %343 = vmatmul.f32.gmra.mxu3 %v297_v10  ;;  %v245_v13 = vpop.f32.mrf.mxu3 }
 0x119   :  { %v246_v14 = vadd.f32 %v245_v13, %v223_v12 }
 0x11b   :  { %v296_v15 = vmax.f32 %v246_v14, 0.0 }
 0x11d   :  { %320 = vmatmul.f32.gmra.mxu2 %v296_v15 }
 0x192   :  { %v341_v17 = vpop.f32.mrf.mxu3 }
 0x198   :  { %v318_v18 = vpop.f32.mrf.mxu2 }
 0x199   :  { %v319_v19 = vadd.f32 %v357_v16, %v318_v18 }
 0x19a   :  { %v344_v23 = vpop.f32.mrf.mxu3 }
 0x19b   :  { %v342_v20 = vadd.f32 %v341_v17, %v319_v19 }
 0x19d   :  { %347 = vst [vmem:[%s742_s7] sm:$0xff] %v342_v20 }
 0x1a0   :  { %v321_v21 = vpop.f32.mrf.mxu2 }
 0x1a1   :  { %v322_v22 = vadd.f32 %v357_v16, %v321_v21 }
 0x1a3   :  { %v345_v24 = vadd.f32 %v344_v23, %v322_v22 }
 0x1a5   :  { %348 = vst [vmem:[%s742_s7 + $0x8] sm:$0xff] %v345_v24 }

</bundles_post_ra>
